<compile_context>
chip_gen: v5e
topology: v5e:2x2
jax: 0.10.0
libtpu: 0.0.40
codegen_flags: <defaults>
</compile_context>

<pallas_src>
import functools

import jax
import jax.numpy as jnp
import numpy as np
from jax import lax
from jax.experimental import pallas as pl
from jax.experimental.pallas import tpu as pltpu

_NEG_BIG = -1e30                 # finite "-inf": exp underflows to exactly 0


def _cdiv(a, b):
    return -(-a // b)


def _round_up(x, m):
    return _cdiv(x, m) * m


# ---------------------------------------------------------------------------
# Generation-aware VMEM budgets (v5e/v6e: 128 MiB, v7x: 64 MiB per TensorCore).
# ---------------------------------------------------------------------------
def _detect_vmem_capacity():
    try:
        cap = getattr(pltpu.get_tpu_info(), "vmem_capacity_bytes", None)
        if cap:
            return int(cap)
    except Exception:
        pass
    return 64 * 1024 * 1024      # conservative: assume a v7x-sized part


_VMEM_CAPACITY = _detect_vmem_capacity()
if _VMEM_CAPACITY >= 96 * 1024 * 1024:       # v5e / v6e class (128 MiB)
    _VMEM_LIMIT = 100 * 1024 * 1024          # scoped-VMEM limit handed to Mosaic
    _TILE_BUDGET = 64 * 1024 * 1024          # budget the tile choosers plan against
else:                                        # v7x class (64 MiB) / unknown
    _VMEM_LIMIT = 48 * 1024 * 1024
    _TILE_BUDGET = 28 * 1024 * 1024


# ---------------------------------------------------------------------------
# Runtime probe: does this build accept pipeline_mode=pl.Buffered(1)?  Used to
# single-buffer constant-index blocks; falls back to default double buffering
# so the kernel always compiles and runs.
# ---------------------------------------------------------------------------
def _probe_buffered():
    try:
        if not hasattr(pl, "Buffered"):
            return False

        def _probe_kernel(c_ref, x_ref, o_ref):
            o_ref[...] = x_ref[...] + c_ref[...]

        f = pl.pallas_call(
            _probe_kernel,
            out_shape=jax.ShapeDtypeStruct((16, 256), jnp.float32),
            grid=(2, 2),
            in_specs=[
                pl.BlockSpec((8, 128), lambda b, i: (b, 0),
                             pipeline_mode=pl.Buffered(1)),
                pl.BlockSpec((8, 128), lambda b, i: (b, i)),
            ],
            out_specs=pl.BlockSpec((8, 128), lambda b, i: (b, i)),
        )
        jax.block_until_ready(f(jnp.zeros((16, 128), jnp.float32),
                                jnp.zeros((16, 256), jnp.float32)))
        return True
    except Exception:
        return False


_BUFFERED_OK = _probe_buffered()


def _spec(shape, index_map, buffer_count=None):
    """BlockSpec helper; applies pl.Buffered(buffer_count) when supported."""
    if buffer_count is not None and buffer_count != 2 and _BUFFERED_OK:
        return pl.BlockSpec(shape, index_map,
                            pipeline_mode=pl.Buffered(buffer_count))
    return pl.BlockSpec(shape, index_map)


# ---------------------------------------------------------------------------
# Tile choosers (account for DMA buffers AND in-kernel f32 temporaries).
# ---------------------------------------------------------------------------
def _choose_proj_tiles(M, D, x_itemsize, budget=None):
    budget = _TILE_BUDGET if budget is None else budget
    # Output-column tile for the (D, tn) weight block: keep the weight fully
    # resident when it fits, otherwise tile the output columns (v7x large-D).
    if D % 128 == 0 and D * D * 2 > budget // 4:
        tn = max(128, ((budget // 4) // (2 * D)) // 128 * 128)
    else:
        tn = D       # single resident block (or D not a lane multiple: full dim)
    n_nt = _cdiv(D, tn)
    w_bufs = 1 if (n_nt == 1 and _BUFFERED_OK) else 2

    if M < 8:
        return M, tn, n_nt, w_bufs
    tm_cap = (M // 8) * 8                       # keep block <= array, mult. of 8
    tm = 8
    for t in (8, 16, 32, 64, 128, 256, 512, 1024, 2048):
        if t > tm_cap:
            break
        need = (2 * t * D * x_itemsize          # x block, double buffered
                + w_bufs * D * tn * 2           # bf16 weight block
                + 2 * tn * 4                    # bias block
                + 2 * t * tn * 2                # bf16 y block, double buffered
                + 2 * t * 4                     # row-sum block
                + t * tn * 4                    # f32 accumulator
                + t * D * 6)                    # in-register bf16 + f32 casts of x
        if need <= budget:
            tm = t
    # v7x megacore: keep >= 2 steps on the parallel (row) axis when possible.
    if _cdiv(M, tm) == 1 and M >= 16:
        tm = min(tm_cap, max(8, _round_up(_cdiv(M, 2), 8)))
    return tm, tn, n_nt, w_bufs


def _choose_lq_tile(Lq, Lk, D, out_itemsize, kp_bufs, budget=None):
    budget = _TILE_BUDGET if budget is None else budget
    if Lq < 8:
        return Lq
    cap = (Lq // 8) * 8
    fixed = kp_bufs * Lk * D * 2 + 2 * Lk * 4       # k' block + key bias
    best = 8
    for t in (8, 16, 32, 64, 128, 256, 512, 1024, 2048):
        if t > cap:
            break
        need = (fixed
                + 2 * t * D * 2                     # q' block, double buffered
                + 2 * t * 4                         # query multiplier block
                + 2 * t * Lk * out_itemsize         # output block, double buffered
                + 2 * t * Lk * 4)                   # f32 scores + exp temporaries
        if need <= budget:
            best = t
    return best


# ---------------------------------------------------------------------------
# Stage 1: y = (x @ W^T + b) * scale  (bf16 MXU, f32 acc), fused |x| row-sum.
# ---------------------------------------------------------------------------
def _proj_kernel(x_ref, w_ref, b_ref, y_ref, rs_ref, *, scale):
    x = x_ref[...]                                  # (tm, D), caller's dtype

    @pl.when(pl.program_id(1) == 0)
    def _():
        # |x| row-sum of the *unprojected* rows -> padding masks downstream.
        rs_ref[...] = jnp.sum(jnp.abs(x.astype(jnp.float32)), axis=-1,
                              keepdims=True)

    acc = jnp.dot(x.astype(jnp.bfloat16), w_ref[...],
                  preferred_element_type=jnp.float32)
    out = acc + b_ref[...]
    if scale != 1.0:                                # folded 1/sqrt(D) (q only)
        out = out * scale
    y_ref[...] = out.astype(y_ref.dtype)


def _project(x_flat, w_t_bf16, b_row, scale):
    """x_flat [M, D] -> (y [M, D] bf16, rowsum(|x|) [M, 1] f32). No padding."""
    M, D = x_flat.shape
    tm, tn, n_nt, w_bufs = _choose_proj_tiles(M, D, x_flat.dtype.itemsize)
    grid = (_cdiv(M, tm), n_nt)
    return pl.pallas_call(
        functools.partial(_proj_kernel, scale=scale),
        out_shape=(jax.ShapeDtypeStruct((M, D), jnp.bfloat16),
                   jax.ShapeDtypeStruct((M, 1), jnp.float32)),
        grid=grid,
        in_specs=[
            pl.BlockSpec((tm, D), lambda i, j: (i, 0)),
            _spec((D, tn), lambda i, j: (0, j), buffer_count=w_bufs),
            pl.BlockSpec((1, tn), lambda i, j: (0, j)),
        ],
        out_specs=(pl.BlockSpec((tm, tn), lambda i, j: (i, j)),
                   pl.BlockSpec((tm, 1), lambda i, j: (i, 0))),
        compiler_params=pltpu.CompilerParams(
            dimension_semantics=("parallel", "arbitrary"),
            vmem_limit_bytes=_VMEM_LIMIT),
    )(x_flat, w_t_bf16, b_row)


# ---------------------------------------------------------------------------
# Stage 2: scores + masked softmax, written at the natural (B, Lq, Lk) shape.
# ---------------------------------------------------------------------------
def _attn_kernel(qp_ref, kp_ref, kbias_ref, qmul_ref, out_ref):
    qp = qp_ref[0]        # (lq_t, D)  bf16, 1/sqrt(D) already folded in
    kp = kp_ref[0]        # (Lk,  D)   bf16
    kbias = kbias_ref[0]  # (1,  Lk)   f32 additive key-padding bias
    qmul = qmul_ref[0]    # (lq_t, 1)  f32 query-padding multiplier

    # Contract the last dims directly: the MXU consumes the transposed operand
    # natively, no XLU transpose / VMEM copy of kp.
    scores = lax.dot_general(qp, kp, (((1,), (1,)), ((), ())),
                             preferred_element_type=jnp.float32)   # (lq_t, Lk)
    scores = scores + kbias                    # masked_fill(attn_mask, -inf)

    m = jnp.max(scores, axis=-1, keepdims=True)
    e = jnp.exp(scores - m)
    # Query-padding multiplier folded into the (lq_t, 1) reciprocal: one small
    # column op instead of a second full-tile multiply.
    inv = pl.reciprocal(jnp.sum(e, axis=-1, keepdims=True), approx=True) * qmul
    out_ref[0] = (e * inv).astype(out_ref.dtype)   # masked_fill(softmax_mask, 0)


@functools.partial(jax.jit, static_argnames=("out_dtype",))
def attention_score(q, k, wq, bq, wk, bk, out_dtype=jnp.float32):
    """q: [B, Lq, D], k: [B, Lk, D]; wq/wk: [D, D] (PyTorch [out, in]); bq/bk: [D].

    Pass out_dtype=jnp.bfloat16 to halve the dominant attention-matrix
    writeback (stage 2 is write-bandwidth bound, especially on v5e).
    """
    B, Lq, D = q.shape
    _, Lk, _ = k.shape

    # Weights as [in, out] bf16 (half the resident footprint); biases stay f32.
    wq_t = wq.T.astype(jnp.bfloat16)
    wk_t = wk.T.astype(jnp.bfloat16)
    bq_row = bq.reshape(1, D).astype(jnp.float32)
    bk_row = bk.reshape(1, D).astype(jnp.float32)

    scale = float(D) ** -0.5   # forward() overwrites `scale` with q.size(-1)**-0.5

    # --- Stage 1: batched projections (+ |row| sums); no upcast, no padding ---
    qp_f, q_rs = _project(q.reshape(B * Lq, D), wq_t, bq_row, scale)
    kp_f, k_rs = _project(k.reshape(B * Lk, D), wk_t, bk_row, 1.0)
    qp = qp_f.reshape(B, Lq, D)
    kp = kp_f.reshape(B, Lk, D)

    # Tiny [B, L] mask tensors (negligible HBM traffic).
    qmul = (q_rs.reshape(B, Lq, 1) != 0.0).astype(jnp.float32)
    kbias = jnp.where(k_rs.reshape(B, 1, Lk) == 0.0,
                      jnp.float32(_NEG_BIG), jnp.float32(0.0))

    # --- Stage 2: scores + masked softmax -----------------------------------
    out_itemsize = jnp.dtype(out_dtype).itemsize
    kp_bufs = 1 if _BUFFERED_OK else 2
    lq_t = _choose_lq_tile(Lq, Lk, D, out_itemsize, kp_bufs)
    # v7x megacore: prefer >= 2 steps along a parallel axis.
    if B == 1 and _cdiv(Lq, lq_t) == 1 and Lq >= 16:
        lq_t = min((Lq // 8) * 8, max(8, _round_up(_cdiv(Lq, 2), 8)))
    n_qt = _cdiv(Lq, lq_t)

    # TODO(synk): for very long Lk (k' block + one (lq_t, Lk) f32 score block
    # exceeding the tile budget) add an Lk-tiled two-pass softmax; here the
    # full key axis stays resident per Lq tile since the [B, Lq, Lk] output
    # must be materialised anyway.
    out = pl.pallas_call(
        _attn_kernel,
        out_shape=jax.ShapeDtypeStruct((B, Lq, Lk), out_dtype),
        grid=(B, n_qt),
        in_specs=[
            pl.BlockSpec((1, lq_t, D), lambda b, i: (b, i, 0)),
            _spec((1, Lk, D), lambda b, i: (b, 0, 0), buffer_count=kp_bufs),
            _spec((1, 1, Lk), lambda b, i: (b, 0, 0), buffer_count=kp_bufs),
            pl.BlockSpec((1, lq_t, 1), lambda b, i: (b, i, 0)),
        ],
        out_specs=pl.BlockSpec((1, lq_t, Lk), lambda b, i: (b, i, 0)),
        compiler_params=pltpu.CompilerParams(
            dimension_semantics=("parallel", "arbitrary"),
            vmem_limit_bytes=_VMEM_LIMIT),
    )(qp, kp, kbias, qmul)
    return out


def attention_score_ref(q, k, wq, bq, wk, bk):
    """Pure-JAX (f32) reference mirroring the PyTorch forward (default mask path)."""
    attn_mask = (jnp.sum(jnp.abs(k), axis=-1) == 0.0)[:, None, :]      # [B,1,Lk]
    softmax_mask = (jnp.sum(jnp.abs(q), axis=-1) == 0.0)[:, :, None]   # [B,Lq,1]
    qp = jnp.einsum("bld,od->blo", q, wq) + bq
    kp = jnp.einsum("bld,od->blo", k, wk) + bk
    scale = qp.shape[-1] ** (-0.5)
    scores = jnp.einsum("bqd,bkd->bqk", qp, kp) * scale
    scores = jnp.where(attn_mask, -jnp.inf, scores)
    attn = jax.nn.softmax(scores, axis=-1)
    return jnp.where(softmax_mask, 0.0, attn)


if __name__ == "__main__":
    B, Lq, Lk, D = 2, 8, 8, 32

    key = jax.random.PRNGKey(0)
    kq, kk, kwq, kbq, kwk, kbk = jax.random.split(key, 6)

    q = jax.random.normal(kq, (B, Lq, D), dtype=jnp.float32)
    k = jax.random.normal(kk, (B, Lk, D), dtype=jnp.float32)
    # Zero one query row and one key row to exercise both padding-mask paths.
    q = q.at[0, 3, :].set(0.0)
    k = k.at[1, 5, :].set(0.0)

    # PyTorch nn.Linear default init: U(-1/sqrt(D), 1/sqrt(D))
    bound = 1.0 / np.sqrt(D)
    wq = jax.random.uniform(kwq, (D, D), jnp.float32, -bound, bound)   # [out, in]
    bq = jax.random.uniform(kbq, (D,), jnp.float32, -bound, bound)
    wk = jax.random.uniform(kwk, (D, D), jnp.float32, -bound, bound)
    bk = jax.random.uniform(kbk, (D,), jnp.float32, -bound, bound)

    out = jax.block_until_ready(attention_score(q, k, wq, bq, wk, bk))
    ref = attention_score_ref(q, k, wq, bq, wk, bk)

    # bf16 MXU operands + approx reciprocal -> loosened tolerance vs f32 reference.
    np.testing.assert_allclose(np.asarray(out), np.asarray(ref), rtol=2e-2, atol=2e-2)

    print("KERNEL_OK")
</pallas_src>

<mosaic_0001>
module attributes {stable_mosaic.version = 11 : i64} {
  func.func @_probe_kernel(%arg0: i32, %arg1: i32, %arg2: memref<8x128xf32, #tpu.memory_space<vmem>>, %arg3: memref<8x128xf32, #tpu.memory_space<vmem>>, %arg4: memref<8x128xf32, #tpu.memory_space<vmem>>) attributes {dimension_semantics = [#tpu.dimension_semantics<arbitrary>, #tpu.dimension_semantics<arbitrary>], iteration_bounds = array<i64: 2, 2>, scalar_prefetch = 0 : i64, scratch_operands = 0 : i64, tpu.core_type = #tpu.core_type<tc>, window_params = [{pipeline_mode = #tpu.pipeline_mode<synchronous>, transform_indices = @transform_0, window_bounds = array<i64: 8, 128>}, {transform_indices = @transform_1, window_bounds = array<i64: 8, 128>}, {transform_indices = @transform_2, window_bounds = array<i64: 8, 128>}]} {
    %c0 = arith.constant 0 : index
    %c0_0 = arith.constant 0 : index
    %0 = vector.load %arg3[%c0, %c0_0] : memref<8x128xf32, #tpu.memory_space<vmem>>, vector<8x128xf32>
    %c0_1 = arith.constant 0 : index
    %c0_2 = arith.constant 0 : index
    %1 = vector.load %arg2[%c0_1, %c0_2] : memref<8x128xf32, #tpu.memory_space<vmem>>, vector<8x128xf32>
    %2 = arith.addf %0, %1 : vector<8x128xf32>
    %c0_3 = arith.constant 0 : index
    %c0_4 = arith.constant 0 : index
    %3 = vector.load %arg4[%c0_3, %c0_4] : memref<8x128xf32, #tpu.memory_space<vmem>>, vector<8x128xf32>
    tpu.vector_store %arg4[%c0_3, %c0_4], %2 {strides = array<i32>} : memref<8x128xf32, #tpu.memory_space<vmem>>, vector<8x128xf32>,
    return
  }
  func.func @transform_0(%arg0: i32, %arg1: i32) -> (i32, i32) {
    %c0_i32 = arith.constant 0 : i32
    %c0_i32_0 = arith.constant 0 : i32
    return %arg0, %c0_i32 : i32, i32
  }
  func.func @transform_1(%arg0: i32, %arg1: i32) -> (i32, i32) {
    %c0_i32 = arith.constant 0 : i32
    return %arg0, %arg1 : i32, i32
  }
  func.func @transform_2(%arg0: i32, %arg1: i32) -> (i32, i32) {
    %c0_i32 = arith.constant 0 : i32
    return %arg0, %arg1 : i32, i32
  }
}

module attributes {stable_mosaic.version = 11 : i64} {
  func.func @_proj_kernel(%arg0: i32, %arg1: i32, %arg2: memref<8x32xf32, #tpu.memory_space<vmem>>, %arg3: memref<32x32xbf16, #tpu.memory_space<vmem>>, %arg4: memref<1x32xf32, #tpu.memory_space<vmem>>, %arg5: memref<8x32xbf16, #tpu.memory_space<vmem>>, %arg6: memref<8x1xf32, #tpu.memory_space<vmem>>) attributes {dimension_semantics = [#tpu.dimension_semantics<parallel>, #tpu.dimension_semantics<arbitrary>], iteration_bounds = array<i64: 2, 1>, scalar_prefetch = 0 : i64, scratch_operands = 0 : i64, tpu.core_type = #tpu.core_type<tc>, window_params = [{transform_indices = @transform_0, window_bounds = array<i64: 8, 32>}, {transform_indices = @transform_1, window_bounds = array<i64: 32, 32>}, {transform_indices = @transform_2, window_bounds = array<i64: 1, 32>}, {transform_indices = @transform_3, window_bounds = array<i64: 8, 32>}, {transform_indices = @transform_4, window_bounds = array<i64: 8, 1>}]} {
    %c0 = arith.constant 0 : index
    %c0_0 = arith.constant 0 : index
    %0 = vector.load %arg2[%c0, %c0_0] : memref<8x32xf32, #tpu.memory_space<vmem>>, vector<8x32xf32>
    %c0_i32 = arith.constant 0 : i32
    %1 = arith.cmpi eq, %arg1, %c0_i32 : i32
    %2 = arith.extui %1 : i1 to i32
    %c0_i32_1 = arith.constant 0 : i32
    %3 = arith.cmpi ne, %2, %c0_i32_1 : i32
    scf.if %3 {
      %12 = math.absf %0 : vector<8x32xf32>
      %cst_8 = arith.constant dense<0.000000e+00> : vector<8xf32>
      %13 = vector.multi_reduction <add>, %12, %cst_8 [1] : vector<8x32xf32> to vector<8xf32>
      %14 = vector.shape_cast %13 : vector<8xf32> to vector<8x1xf32>
      %c0_9 = arith.constant 0 : index
      %c0_10 = arith.constant 0 : index
      %15 = vector.load %arg6[%c0_9, %c0_10] : memref<8x1xf32, #tpu.memory_space<vmem>>, vector<8x1xf32>
      tpu.vector_store %arg6[%c0_9, %c0_10], %14 {strides = array<i32>} : memref<8x1xf32, #tpu.memory_space<vmem>>, vector<8x1xf32>,
    } else {
    }
    %4 = arith.truncf %0 : vector<8x32xf32> to vector<8x32xbf16>
    %c0_2 = arith.constant 0 : index
    %c0_3 = arith.constant 0 : index
    %5 = vector.load %arg3[%c0_2, %c0_3] : memref<32x32xbf16, #tpu.memory_space<vmem>>, vector<32x32xbf16>
    %cst = arith.constant dense<0.000000e+00> : vector<8x32xf32>
    %6 = tpu.matmul %4, %5, %cst {dimension_numbers = #tpu.dot_dimension_numbers<[1], [0], [0], [1], [0, 0, 1, 1], [], []>} : vector<8x32xbf16>, vector<32x32xbf16>, vector<8x32xf32> -> vector<8x32xf32>
    %c0_4 = arith.constant 0 : index
    %c0_5 = arith.constant 0 : index
    %7 = vector.load %arg4[%c0_4, %c0_5] : memref<1x32xf32, #tpu.memory_space<vmem>>, vector<1x32xf32>
    %8 = vector.broadcast %7 : vector<1x32xf32> to vector<8x32xf32>
    %9 = arith.addf %6, %8 : vector<8x32xf32>
    %10 = arith.truncf %9 : vector<8x32xf32> to vector<8x32xbf16>
    %c0_6 = arith.constant 0 : index
    %c0_7 = arith.constant 0 : index
    %11 = vector.load %arg5[%c0_6, %c0_7] : memref<8x32xbf16, #tpu.memory_space<vmem>>, vector<8x32xbf16>
    tpu.vector_store %arg5[%c0_6, %c0_7], %10 {strides = array<i32>} : memref<8x32xbf16, #tpu.memory_space<vmem>>, vector<8x32xbf16>,
    return
  }
  func.func @transform_0(%arg0: i32, %arg1: i32) -> (i32, i32) {
    %c0_i32 = arith.constant 0 : i32
    %c0_i32_0 = arith.constant 0 : i32
    return %arg0, %c0_i32 : i32, i32
  }
  func.func @transform_1(%arg0: i32, %arg1: i32) -> (i32, i32) {
    %c0_i32 = arith.constant 0 : i32
    %c0_i32_0 = arith.constant 0 : i32
    return %c0_i32, %arg1 : i32, i32
  }
  func.func @transform_2(%arg0: i32, %arg1: i32) -> (i32, i32) {
    %c0_i32 = arith.constant 0 : i32
    %c0_i32_0 = arith.constant 0 : i32
    return %c0_i32, %arg1 : i32, i32
  }
  func.func @transform_3(%arg0: i32, %arg1: i32) -> (i32, i32) {
    %c0_i32 = arith.constant 0 : i32
    return %arg0, %arg1 : i32, i32
  }
  func.func @transform_4(%arg0: i32, %arg1: i32) -> (i32, i32) {
    %c0_i32 = arith.constant 0 : i32
    %c0_i32_0 = arith.constant 0 : i32
    return %arg0, %c0_i32 : i32, i32
  }
}

module attributes {stable_mosaic.version = 11 : i64} {
  func.func @_proj_kernel(%arg0: i32, %arg1: i32, %arg2: memref<8x32xf32, #tpu.memory_space<vmem>>, %arg3: memref<32x32xbf16, #tpu.memory_space<vmem>>, %arg4: memref<1x32xf32, #tpu.memory_space<vmem>>, %arg5: memref<8x32xbf16, #tpu.memory_space<vmem>>, %arg6: memref<8x1xf32, #tpu.memory_space<vmem>>) attributes {dimension_semantics = [#tpu.dimension_semantics<parallel>, #tpu.dimension_semantics<arbitrary>], iteration_bounds = array<i64: 2, 1>, scalar_prefetch = 0 : i64, scratch_operands = 0 : i64, tpu.core_type = #tpu.core_type<tc>, window_params = [{transform_indices = @transform_0, window_bounds = array<i64: 8, 32>}, {transform_indices = @transform_1, window_bounds = array<i64: 32, 32>}, {transform_indices = @transform_2, window_bounds = array<i64: 1, 32>}, {transform_indices = @transform_3, window_bounds = array<i64: 8, 32>}, {transform_indices = @transform_4, window_bounds = array<i64: 8, 1>}]} {
    %c0 = arith.constant 0 : index
    %c0_0 = arith.constant 0 : index
    %0 = vector.load %arg2[%c0, %c0_0] : memref<8x32xf32, #tpu.memory_space<vmem>>, vector<8x32xf32>
    %c0_i32 = arith.constant 0 : i32
    %1 = arith.cmpi eq, %arg1, %c0_i32 : i32
    %2 = arith.extui %1 : i1 to i32
    %c0_i32_1 = arith.constant 0 : i32
    %3 = arith.cmpi ne, %2, %c0_i32_1 : i32
    scf.if %3 {
      %14 = math.absf %0 : vector<8x32xf32>
      %cst_9 = arith.constant dense<0.000000e+00> : vector<8xf32>
      %15 = vector.multi_reduction <add>, %14, %cst_9 [1] : vector<8x32xf32> to vector<8xf32>
      %16 = vector.shape_cast %15 : vector<8xf32> to vector<8x1xf32>
      %c0_10 = arith.constant 0 : index
      %c0_11 = arith.constant 0 : index
      %17 = vector.load %arg6[%c0_10, %c0_11] : memref<8x1xf32, #tpu.memory_space<vmem>>, vector<8x1xf32>
      tpu.vector_store %arg6[%c0_10, %c0_11], %16 {strides = array<i32>} : memref<8x1xf32, #tpu.memory_space<vmem>>, vector<8x1xf32>,
    } else {
    }
    %4 = arith.truncf %0 : vector<8x32xf32> to vector<8x32xbf16>
    %c0_2 = arith.constant 0 : index
    %c0_3 = arith.constant 0 : index
    %5 = vector.load %arg3[%c0_2, %c0_3] : memref<32x32xbf16, #tpu.memory_space<vmem>>, vector<32x32xbf16>
    %cst = arith.constant dense<0.000000e+00> : vector<8x32xf32>
    %6 = tpu.matmul %4, %5, %cst {dimension_numbers = #tpu.dot_dimension_numbers<[1], [0], [0], [1], [0, 0, 1, 1], [], []>} : vector<8x32xbf16>, vector<32x32xbf16>, vector<8x32xf32> -> vector<8x32xf32>
    %c0_4 = arith.constant 0 : index
    %c0_5 = arith.constant 0 : index
    %7 = vector.load %arg4[%c0_4, %c0_5] : memref<1x32xf32, #tpu.memory_space<vmem>>, vector<1x32xf32>
    %8 = vector.broadcast %7 : vector<1x32xf32> to vector<8x32xf32>
    %9 = arith.addf %6, %8 : vector<8x32xf32>
    %cst_6 = arith.constant 0.176776692 : f32
    %10 = vector.broadcast %cst_6 : f32 to vector<8x32xf32>
    %11 = arith.mulf %9, %10 : vector<8x32xf32>
    %12 = arith.truncf %11 : vector<8x32xf32> to vector<8x32xbf16>
    %c0_7 = arith.constant 0 : index
    %c0_8 = arith.constant 0 : index
    %13 = vector.load %arg5[%c0_7, %c0_8] : memref<8x32xbf16, #tpu.memory_space<vmem>>, vector<8x32xbf16>
    tpu.vector_store %arg5[%c0_7, %c0_8], %12 {strides = array<i32>} : memref<8x32xbf16, #tpu.memory_space<vmem>>, vector<8x32xbf16>,
    return
  }
  func.func @transform_0(%arg0: i32, %arg1: i32) -> (i32, i32) {
    %c0_i32 = arith.constant 0 : i32
    %c0_i32_0 = arith.constant 0 : i32
    return %arg0, %c0_i32 : i32, i32
  }
  func.func @transform_1(%arg0: i32, %arg1: i32) -> (i32, i32) {
    %c0_i32 = arith.constant 0 : i32
    %c0_i32_0 = arith.constant 0 : i32
    return %c0_i32, %arg1 : i32, i32
  }
  func.func @transform_2(%arg0: i32, %arg1: i32) -> (i32, i32) {
    %c0_i32 = arith.constant 0 : i32
    %c0_i32_0 = arith.constant 0 : i32
    return %c0_i32, %arg1 : i32, i32
  }
  func.func @transform_3(%arg0: i32, %arg1: i32) -> (i32, i32) {
    %c0_i32 = arith.constant 0 : i32
    return %arg0, %arg1 : i32, i32
  }
  func.func @transform_4(%arg0: i32, %arg1: i32) -> (i32, i32) {
    %c0_i32 = arith.constant 0 : i32
    %c0_i32_0 = arith.constant 0 : i32
    return %arg0, %c0_i32 : i32, i32
  }
}

module attributes {stable_mosaic.version = 11 : i64} {
  func.func @_attn_kernel(%arg0: i32, %arg1: i32, %arg2: memref<1x8x32xbf16, #tpu.memory_space<vmem>>, %arg3: memref<1x8x32xbf16, #tpu.memory_space<vmem>>, %arg4: memref<1x1x8xf32, #tpu.memory_space<vmem>>, %arg5: memref<1x8x1xf32, #tpu.memory_space<vmem>>, %arg6: memref<1x8x8xf32, #tpu.memory_space<vmem>>) attributes {dimension_semantics = [#tpu.dimension_semantics<parallel>, #tpu.dimension_semantics<arbitrary>], iteration_bounds = array<i64: 2, 1>, scalar_prefetch = 0 : i64, scratch_operands = 0 : i64, tpu.core_type = #tpu.core_type<tc>, window_params = [{transform_indices = @transform_0, window_bounds = array<i64: 1, 8, 32>}, {transform_indices = @transform_1, window_bounds = array<i64: 1, 8, 32>}, {transform_indices = @transform_2, window_bounds = array<i64: 1, 1, 8>}, {transform_indices = @transform_3, window_bounds = array<i64: 1, 8, 1>}, {transform_indices = @transform_4, window_bounds = array<i64: 1, 8, 8>}]} {
    %c0 = arith.constant 0 : index
    %c0_0 = arith.constant 0 : index
    %c0_1 = arith.constant 0 : index
    %0 = vector.load %arg2[%c0, %c0_0, %c0_1] : memref<1x8x32xbf16, #tpu.memory_space<vmem>>, vector<1x8x32xbf16>
    %1 = vector.shape_cast %0 : vector<1x8x32xbf16> to vector<8x32xbf16>
    %c0_2 = arith.constant 0 : index
    %c0_3 = arith.constant 0 : index
    %c0_4 = arith.constant 0 : index
    %2 = vector.load %arg3[%c0_2, %c0_3, %c0_4] : memref<1x8x32xbf16, #tpu.memory_space<vmem>>, vector<1x8x32xbf16>
    %3 = vector.shape_cast %2 : vector<1x8x32xbf16> to vector<8x32xbf16>
    %c0_5 = arith.constant 0 : index
    %c0_6 = arith.constant 0 : index
    %c0_7 = arith.constant 0 : index
    %4 = vector.load %arg4[%c0_5, %c0_6, %c0_7] : memref<1x1x8xf32, #tpu.memory_space<vmem>>, vector<1x1x8xf32>
    %5 = vector.shape_cast %4 : vector<1x1x8xf32> to vector<1x8xf32>
    %c0_8 = arith.constant 0 : index
    %c0_9 = arith.constant 0 : index
    %c0_10 = arith.constant 0 : index
    %6 = vector.load %arg5[%c0_8, %c0_9, %c0_10] : memref<1x8x1xf32, #tpu.memory_space<vmem>>, vector<1x8x1xf32>
    %7 = vector.shape_cast %6 : vector<1x8x1xf32> to vector<8x1xf32>
    %cst = arith.constant dense<0.000000e+00> : vector<8x8xf32>
    %8 = tpu.matmul %1, %3, %cst {dimension_numbers = #tpu.dot_dimension_numbers<[1], [1], [0], [0], [0, 0, 1, 0], [], []>} : vector<8x32xbf16>, vector<8x32xbf16>, vector<8x8xf32> -> vector<8x8xf32>
    %9 = vector.broadcast %5 : vector<1x8xf32> to vector<8x8xf32>
    %10 = arith.addf %8, %9 : vector<8x8xf32>
    %cst_11 = arith.constant dense<0xFF800000> : vector<8xf32>
    %11 = vector.multi_reduction <maximumf>, %10, %cst_11 [1] : vector<8x8xf32> to vector<8xf32>
    %12 = vector.shape_cast %11 : vector<8xf32> to vector<8x1xf32>
    %13 = vector.broadcast %12 : vector<8x1xf32> to vector<8x8xf32>
    %14 = arith.subf %10, %13 : vector<8x8xf32>
    %15 = math.exp %14 : vector<8x8xf32>
    %cst_12 = arith.constant dense<0.000000e+00> : vector<8xf32>
    %16 = vector.multi_reduction <add>, %15, %cst_12 [1] : vector<8x8xf32> to vector<8xf32>
    %17 = vector.shape_cast %16 : vector<8xf32> to vector<8x1xf32>
    %18 = tpu.reciprocal %17 {approx = true} : vector<8x1xf32> -> vector<8x1xf32>
    %19 = arith.mulf %18, %7 : vector<8x1xf32>
    %20 = vector.broadcast %19 : vector<8x1xf32> to vector<8x8xf32>
    %21 = arith.mulf %15, %20 : vector<8x8xf32>
    %c0_13 = arith.constant 0 : index
    %c0_14 = arith.constant 0 : index
    %c0_15 = arith.constant 0 : index
    %22 = vector.load %arg6[%c0_13, %c0_14, %c0_15] : memref<1x8x8xf32, #tpu.memory_space<vmem>>, vector<1x8x8xf32>
    %23 = vector.shape_cast %22 : vector<1x8x8xf32> to vector<8x8xf32>
    %24 = vector.shape_cast %21 : vector<8x8xf32> to vector<1x8x8xf32>
    tpu.vector_store %arg6[%c0_13, %c0_14, %c0_15], %24 {strides = array<i32>} : memref<1x8x8xf32, #tpu.memory_space<vmem>>, vector<1x8x8xf32>,
    return
  }
  func.func @transform_0(%arg0: i32, %arg1: i32) -> (i32, i32, i32) {
    %c0_i32 = arith.constant 0 : i32
    %c0_i32_0 = arith.constant 0 : i32
    return %arg0, %arg1, %c0_i32 : i32, i32, i32
  }
  func.func @transform_1(%arg0: i32, %arg1: i32) -> (i32, i32, i32) {
    %c0_i32 = arith.constant 0 : i32
    %c0_i32_0 = arith.constant 0 : i32
    %c0_i32_1 = arith.constant 0 : i32
    return %arg0, %c0_i32, %c0_i32_0 : i32, i32, i32
  }
  func.func @transform_2(%arg0: i32, %arg1: i32) -> (i32, i32, i32) {
    %c0_i32 = arith.constant 0 : i32
    %c0_i32_0 = arith.constant 0 : i32
    %c0_i32_1 = arith.constant 0 : i32
    return %arg0, %c0_i32, %c0_i32_0 : i32, i32, i32
  }
  func.func @transform_3(%arg0: i32, %arg1: i32) -> (i32, i32, i32) {
    %c0_i32 = arith.constant 0 : i32
    %c0_i32_0 = arith.constant 0 : i32
    return %arg0, %arg1, %c0_i32 : i32, i32, i32
  }
  func.func @transform_4(%arg0: i32, %arg1: i32) -> (i32, i32, i32) {
    %c0_i32 = arith.constant 0 : i32
    %c0_i32_0 = arith.constant 0 : i32
    return %arg0, %arg1, %c0_i32 : i32, i32, i32
  }
}

</mosaic_0001>

<bundles_post_ra>
// kernel: tpu_custom_call.1
= control target key start
LH: loop header
LB: loop body
LE: loop exit
PB: predicated region body
PF: predicated region fallthrough
CT: control target
= control target key end

     0   :  { %s864_s0 = inlined_call_operand.hbm [shape: f32[16,128], index: 0, kind: input, shape index: {}]   ;;  %s865_s1 = inlined_call_operand.hbm [shape: f32[16,256], index: 1, kind: input, shape index: {}]   ;;  %s866_s2 = inlined_call_operand.hbm [shape: f32[16,256], index: 2, kind: output, shape index: {}]  }
   0x1   :  { %874 = sst [smem:[#allocation17_spill]] %s864_s0 }
   0x2   :  { %875 = sst [smem:[#allocation18_spill]] %s866_s2 }
   0x3   :  { %7 = vsyncpa [#allocation3], 0 }
   0x4   :  { %8 = vsyncpa [#allocation6], 0 }
   0x5   :  { %10 = vsyncpa [#allocation6 + $0x1], 0 }
   0x6   :  { %11 = vsyncpa [#allocation4], 0 }
   0x7   :  { %13 = vsyncpa [#allocation4 + $0x1], 0  ;;  %s651_s9 = smov 0   ;;  %s653_s10 = smov 0  }
   0x8   :  { %s655_s11 = smov 0   ;;  %s657_s12 = smov 0  }
   0x9   :  { %s659_s13 = smov 0   ;;  %s661_s14 = smov 0  }
   0xa   :  { %s663_s15 = smov 0   ;;  %s665_s16 = smov 0  }
   0xb   :  { %s667_s17 = smov 0   ;;  %s669_s18 = smov 0  }
   0xc   :  { %s671_s19 = smov 0  }
   0xd LB: > { %876 = sst [smem:[#allocation11_spill]] %s593_s9  ;;  %s322_s20 = sadd.s32 4294967295, %s633_s19   ;;  %s633_s19 = sphi %s671_s19, %s19_s19   ;;  %s629_s18 = sphi %s669_s18, %s906_s18   ;;  %s625_s17 = sphi %s667_s17, %s905_s17   ;;  %s621_s16 = sphi %s665_s16, %s904_s16   ;;  %s617_s15 = sphi %s663_s15, %s903_s15   ;;  %s613_s14 = sphi %s661_s14, %s902_s14   ;;  %s609_s13 = sphi %s659_s13, %s901_s13   ;;  %s605_s12 = sphi %s657_s12, %s896_s12   ;;  %s601_s11 = sphi %s655_s11, %s900_s11   ;;  %s597_s10 = sphi %s653_s10, %s899_s10   ;;  %s593_s9 = sphi %s651_s9, %s898_s9  }
   0xe   : > { %877 = sst [smem:[#allocation12_spill]] %s609_s13  ;;  %s323_s21 = sadd.s32 4294967294, %s633_s19  }
   0xf   : > { %878 = sst [smem:[#allocation13_spill]] %s617_s15  ;;  %p51_p0 = scmp.ne.s32.totalorder %s609_s13, %s605_s12 }
  0x10   : > { %p52_p1 = scmp.eq.s32.totalorder %s322_s20, 0  ;;  %p79_p2 = scmp.ne.s32.totalorder %s597_s10, %s593_s9 }
  0x11   : > { %p709_p3 = scmp.eq.s32.totalorder %s322_s20, 3  ;;  %p111_p5 = scmp.eq.s32.totalorder %s323_s21, 3 }
  0x12   : > { %p713_p4 = por %p52_p1, %p51_p0  ;;  %p717_p6 = por %p79_p2, %p52_p1 }
  0x13   : > { %p324_p7 = scmp.ge.s32.totalorder %s633_s19, 1  ;;  %p722_p8 = por %p111_p5, %p79_p2 }
  0x14   : > { %p118_p9 = scmp.lt.s32.totalorder %s633_s19, 5  ;;  %s325_s26 = sshll.u32 %s621_s16, 3 }
  0x15   : > { %s882_s25 = scalar_select %p722_p8, 1, 0 }
  0x16   : > { %p728_p10 = pnand %p324_p7, %p118_p9  ;;  %s885_s0 = sld [smem:[#allocation17_spill]] }
  0x17   : > { %883 = sst [smem:[#allocation14_spill]] %s882_s25  ;;  %s635_s4 = smov [#allocation2]  }
  0x18   : > { %s134_s5 = sshll.u32 %s635_s4, 4  ;;  %p344_p11 = pneg %p728_p10  ;;  %s135_s5 = int_to_ptr.vmem [resolvable:$true] %s134_s5 }
  0x1a   : > { %p739_p12 = pnand %p344_p11, %p713_p4 }
  0x1c   : > { %s130_s30 = scalar_lea.hbm %s885_s0, %s325_s26  ;;  %p451_p0 = pneg %p739_p12 }
  0x1d   : > { %s132_s3 = sshll.u32 %s130_s30, 4  ;;  %s454_s21 = scalar_lea.hbm %s885_s0, 16  ;;  %s133_s3 = int_to_ptr.hbm [resolvable:$true] %s132_s3 }
  0x1e   : > { %s447_s7 = sshra.s32 %s133_s3, 4  ;;  %s448_s7 = int_to_ptr.hbm [resolvable:$true] %s447_s7 }
  0x1f   : > { %s449_s8 = scalar_lea.hbm %s448_s7, 8  ;;  %p455_p5 = scmp.lt.s32.totalorder %s448_s7, %s885_s0 }
  0x20   : > { %p450_p13 = scmp.ne.s32.totalorder %s448_s7, %s449_s8  ;;  %p456_p7 = scmp.lt.s32.totalorder %s454_s21, %s449_s8 }
  0x22   : > { %p452_p1 = pnand %p451_p0, %p450_p13  ;;  %p457_p9 = por %p456_p7, %p455_p5 }
  0x24   : > { %p453_p2 = pneg %p452_p1 }
  0x26   : > { %p458_p11 = pnand %p457_p9, %p453_p2 }
  0x28   : > { %461 = shalt.err (!%p458_p11)
}
  0x29   : > { %347 = dma.hbm_to_vmem [thread:$0]  (!%p739_p12), %s133_s3, 128, %s135_s5, [#allocation3]  }
  0x2a   : > { %s28_s29 = sadd.s32 1, %s625_s17  ;;  %s31_s30 = sadd.s32 1, %s629_s18 }
  0x2b   : > { %p29_p13 = scmp.ge.s32.totalorder %s28_s29, 2  ;;  %s38_s4 = sadd.s32 1, %s613_s14 }
  0x2c   : > { %s66_s6 = sadd.s32 1, %s601_s11  ;;  %p73_p0 = scmp.ne.s32.totalorder %s601_s11, %s597_s10 }
  0x2d   : > { %s908_s29 = smov (%p29_p13, %s28_s29), 0  ;;  %s910_s30 = smov (!%p29_p13, %s31_s30), %s629_s18 }
  0x2e   : > { %887 = sst [smem:[#allocation15_spill]] %s908_s29  ;;  %s62_s7 = ssub.s32 %s625_s17, %s908_s29 }
  0x2f   : > { %p74_p1 = scmp.eq.s32.totalorder %s633_s19, 0  ;;  %p33_p2 = scmp.ge.s32.totalorder %s910_s30, 2 }
  0x30   : > { %p767_p12 = por %p709_p3, %p73_p0  ;;  %p356_p7 = scmp.lt.s32.totalorder %s633_s19, 4 }
  0x31   : > { %p771_p5 = por %p74_p1, %p73_p0  ;;  %s912_s30 = smov (%p33_p2, %s910_s30), 0 }
  0x32   : > { %s888_s3 = scalar_select %p767_p12, 1, 0 }
  0x33   : > { %s145_s8 = sand.u32 1, %s601_s11   ;;  %s328_s12 = sshll.u32 %s629_s18, 1 }
  0x34   : > { %889 = sst [smem:[#allocation16_spill]] %s888_s3  ;;  %s35_s20 = ssub.s32 %s629_s18, %s912_s30 }
  0x35   : > { %p36_p9 = scmp.eq.s32.totalorder %s35_s20, 0  ;;  %s63_s21 = sor.u32 %s62_s7, %s35_s20 }
  0x36   : > { %p64_p11 = scmp.eq.s32.totalorder %s63_s21, 0  ;;  %s327_s22 = sshll.u32 %s145_s8, 3 }
  0x37   : > { %s783_s26 = scalar_select %p36_p9, %s613_s14, %s38_s4  }
  0x38   : > { %s786_s28 = scalar_select %p64_p11, %s601_s11, %s66_s6  }
  0x39   : > { %s153_s0 = sadd.s32 %s625_s17, %s328_s12  ;;  %s149_s13 = scalar_lea.vmem [#allocation5], %s327_s22 }
  0x3a   : > { %s329_s29 = sshll.u32 %s153_s0, 3  ;;  %s159_s25 = sshll.u32 %s149_s13, 4  ;;  %s160_s25 = int_to_ptr.vmem [resolvable:$true] %s159_s25 }
  0x3b   : > { %s155_s2 = scalar_lea.hbm %s865_s1, %s329_s29  ;;  %p349_p3 = pnand %p356_p7, %p771_p5 }
  0x3c   : > { %s157_s15 = sshll.u32 %s155_s2, 4  ;;  %s146_s7 = scalar_lea.sflag [#allocation6], %s145_s8  ;;  %s158_s15 = int_to_ptr.hbm [resolvable:$true] %s157_s15 }
  0x3d   : > { %351 = dma.hbm_to_vmem [thread:$0]  (!%p349_p3), %s158_s15, 128, %s160_s25, %s146_s7  }
  0x3e   : > { %168 = sbr.rel (%p728_p10) target bundleno = 94 (0x5e), region = 28 }
  0x43   : > { %580 = dma.done.wait (%p713_p4), [#allocation3], 128  }
  0x44   : > { %582 = vsyncadd (%p713_p4), [#allocation3], 4294967168  ;;  %s803_s0 = sand.u32 1, %s597_s10  }
  0x45   : > { %s331_s2 = sshll.u32 %s803_s0, 3  ;;  %s176_s9 = scalar_lea.sflag [#allocation6], %s803_s0 }
  0x46   : > { %s179_s13 = scalar_lea.vmem [#allocation5], %s331_s2 }
  0x47   : > { %584 = dma.done.wait (%p717_p6), %s176_s9, 128  }
  0x48   : > { %586 = vsyncadd (%p717_p6), %s176_s9, 4294967168  ;;  %s891_s15 = sld [smem:[#allocation13_spill]]  ;;  %s334_s25 = sshll.u32 %s621_s16, 1  ;;  %v201_v0 = vld [vmem:[%s179_s13] sm:$0xff]  ;;  %v202_v1 = vld [vmem:[#allocation2] sm:$0xff] }
  0x49   : > { %s892_s6 = sld [smem:[#allocation18_spill]]  ;;  %s200_s8 = scalar_lea.vmem [#allocation7], %s331_s2  ;;  %v203_v2 = vadd.f32 %v202_v1, %v201_v0 }
  0x4a   : > { %s220_s12 = sshll.u32 %s200_s8, 4  ;;  %s206_s24 = scalar_lea.sflag [#allocation4], %s803_s0  ;;  %s221_s12 = int_to_ptr.vmem [resolvable:$true] %s220_s12 }
  0x4b   : > { %204 = vst [vmem:[%s200_s8] sm:$0xff] %v203_v2 }
  0x4e   : > { %s216_s23 = sadd.s32 %s891_s15, %s334_s25 }
  0x4f   : > { %s335_s27 = sshll.u32 %s216_s23, 3  ;;  %s527_s2 = scalar_lea.hbm %s892_s6, 32 }
  0x50   : > { %s218_s5 = scalar_lea.hbm %s892_s6, %s335_s27 }
  0x51   : > { %s222_s20 = sshll.u32 %s218_s5, 4  ;;  %s223_s20 = int_to_ptr.hbm [resolvable:$true] %s222_s20 }
  0x52   : > { %s521_s21 = sshra.s32 %s223_s20, 4  ;;  %s522_s21 = int_to_ptr.hbm [resolvable:$true] %s521_s21 }
  0x53   : > { %s523_s16 = scalar_lea.hbm %s522_s21, 8  ;;  %p528_p13 = scmp.lt.s32.totalorder %s522_s21, %s892_s6 }
  0x54   : > { %p524_p4 = scmp.ne.s32.totalorder %s522_s21, %s523_s16  ;;  %p529_p0 = scmp.lt.s32.totalorder %s527_s2, %s523_s16 }
  0x56   : > { %p525_p6 = pnand %p524_p4, %p767_p12  ;;  %p530_p1 = por %p529_p0, %p528_p13 }
  0x58   : > { %p526_p10 = pneg %p525_p6 }
  0x5a   : > { %p531_p2 = pnand %p530_p1, %p526_p10 }
  0x5c   : > { %534 = shalt.err (!%p531_p2)
}
  0x5d   : > { %342 = dma.vmem_to_hbm [thread:$0]  (%p767_p12), %s221_s12, 128, %s223_s20, %s206_s24  }
  0x5e PF: > { %s894_s0 = sld [smem:[#allocation11_spill]]  ;;  %p357_p5 = scmp.ge.s32.totalorder %s633_s19, 2 }
  0x60   : > { %p353_p7 = pnand %p357_p5, %p722_p8 }
  0x62   : > { %p354_p9 = pneg %p353_p7 }
  0x64   : > { %s234_s25 = sand.u32 1, %s894_s0  }
  0x65   : > { %s235_s23 = scalar_lea.sflag [#allocation4], %s234_s25 }
  0x66   : > { %588 = dma.done.wait (%p354_p9), %s235_s23, 128  }
  0x67   : > { %590 = vsyncadd (%p354_p9), %s235_s23, 4294967168  ;;  %s19_s19 = sadd.s32 1, %s633_s19   ;;  %s896_s12 = sld [smem:[#allocation12_spill]] }
  0x68   : > { %p16_p11 = scmp.ge.s32.totalorder %s19_s19, 6   ;;  %s897_s27 = sld [smem:[#allocation15_spill]] }
  0x69   : > { %s898_s9 = smov %s597_s10  ;;  %s899_s10 = smov %s601_s11 }
  0x6a   : > { %s900_s11 = smov %s786_s28  ;;  %s901_s13 = smov %s613_s14 }
  0x6b   : > { %s902_s14 = smov %s783_s26  ;;  %s903_s15 = smov %s625_s17 }
  0x6c   : > { %s904_s16 = smov %s629_s18  ;;  %s906_s18 = smov %s912_s30 }
  0x6d   :  { %18 = sbr.rel (!%p16_p11) target bundleno = 13 (0xd), region = 79 }
  0x6e   : > { %s905_s17 = smov %s897_s27 }
  0x72   :  { %241 = vsyncpa [#allocation3], 1 }
  0x73   :  { %243 = vsyncpa [#allocation3 + $0x1], 1 }
  0x74   :  { %244 = vsyncpa [#allocation6], 1 }
  0x75   :  { %246 = vsyncpa [#allocation6 + $0x1], 1 }
  0x76   :  { %247 = vsyncpa [#allocation4], 1 }
  0x77   :  { %249 = vsyncpa [#allocation4 + $0x1], 1 }

// kernel: attention_score.4
= control target key start
LH: loop header
LB: loop body
LE: loop exit
PB: predicated region body
PF: predicated region fallthrough
CT: control target
= control target key end

     0   :  { %s536_s15 = smov 0   ;;  %s538_s16 = smov 0   ;;  %s581_s0 = inlined_call_operand.vmem [shape: f32[16,32], index: 0, kind: input, shape index: {}]   ;;  %s582_s1 = inlined_call_operand.vmem [shape: bf16[32,32], index: 1, kind: input, shape index: {}]   ;;  %s583_s2 = inlined_call_operand.vmem [shape: f32[1,32], index: 2, kind: input, shape index: {}]   ;;  %s584_s3 = inlined_call_operand.vmem [shape: bf16[16,32], index: 3, kind: output, shape index: {0}]   ;;  %s585_s4 = inlined_call_operand.vmem [shape: f32[16,1], index: 4, kind: output, shape index: {1}]  }
   0x1   :  { %s540_s17 = smov 0  }
   0x2 LB: > { %s27_s18 = sadd.s32 1, %s505_s16  ;;  %p445_p0 = scmp.ge.s32.totalorder %s509_s17, 1  ;;  %s509_s17 = sphi %s540_s17, %s15_s17   ;;  %s505_s16 = sphi %s538_s16, %s587_s16   ;;  %s501_s15 = sphi %s536_s15, %s586_s15  }
   0x3   : > { %p29_p1 = scmp.ge.s32.totalorder %s27_s18, 2  ;;  %p195_p2 = scmp.lt.s32.totalorder %s509_s17, 3 }
   0x5   : > { %s589_s18 = smov (%p29_p1, %s27_s18), 0  ;;  %p196_p3 = pnand %p445_p0, %p195_p2 }
   0x6   : > { %p233_p4 = scmp.lt.s32.totalorder (!%p196_p3), %s501_s15, 1 }
   0x7   : > { %199 = sbr.rel (%p196_p3) target bundleno = 154 (0x9a), region = 32 }
   0xc   : > { %v461_v0 = vld [vmem:[%s582_s1 + $0x8] sm:$0xff]  ;;  %v460_v1 = vld [vmem:[%s582_s1] sm:$0xff]  ;;  %s591_s15 = smov (!%p233_p4, %s501_s15), 1  ;;  %vm262_vm0 = vcmask 261120   ;;  %vm266_vm1 = vcmask 7168   ;;  %vm307_vm2 = vcmask 257024  }
   0xd   : > { %299 = vmatpush.bf16.msra.mxu0 %v461_v0  ;;  %s446_s23 = sshll.u32 %s591_s15, 3  ;;  %v486_v7 = vld [vmem:[%s583_s2] ss:$0 sm:$0xff]  ;;  %s447_s6 = sshll.u32 %s591_s15, 2 }
   0xe   : > { %s236_s26 = scalar_lea.vmem %s581_s0, %s446_s23  ;;  %s254_s29 = scalar_lea.vmem %s585_s4, %s446_s23 }
   0xf   : > { %v256_v2 = vld [vmem:[%s236_s26] sm:$0xff]  ;;  %s250_s9 = scalar_lea.vmem %s584_s3, %s447_s6 }
  0x10   : > { %v268_v3 = vpack.c.bf16 %v256_v2, %v256_v2  ;;  %v261_v4 = vand.u32 2147483647, %v256_v2 }
  0x11   : > { %300 = vmatpush.bf16.msra.mxu0 %v460_v1 }
  0x12   : > { %v263_v5 = vsel %vm262_vm0, %v261_v4, 0.0 }
  0x13   : > { %264 = vadd.xlane.f32.xlu0 %v263_v5 }
  0x14   : > { %457 = vmatmul.msk.bf16.vlgmr.msra.gmra.mxu0 %vm262_vm0, %v268_v3 }
  0x86   : > { %v265_v6 = vpop.xlane.xlu0 %264 }
  0x87   : > { %267 = vst.msk [vmem:[%s254_s29] sm:$0xff] %vm266_vm1, %v265_v6 }
  0x91   : > { %v302_v8 = vpop.f32.mrf.mxu0 }
  0x92   : > { %v303_v9 = vadd.f32 %v486_v7, %v302_v8 }
  0x94   : > { %v306_v10 = vpack.c.bf16 %v303_v9, %v303_v9 }
  0x96   : > { %308 = vst.msk [vmem:[%s250_s9] sm:$0xf] %vm307_vm2, %v306_v10 }
  0x99   : > { %v304_v11 = vpop.f32.mrf.mxu0 }
  0x9a PF: > { %s15_s17 = sadd.s32 1, %s509_s17   ;;  %s586_s15 = smov %s505_s16 }
  0x9b   : > { %p12_p5 = scmp.ge.s32.totalorder %s15_s17, 4   ;;  %s587_s16 = smov %s589_s18 }
  0x9d   :  { %14 = sbr.rel (!%p12_p5) target bundleno = 2 (0x2), region = 84 }

// kernel: attention_score.3
= control target key start
LH: loop header
LB: loop body
LE: loop exit
PB: predicated region body
PF: predicated region fallthrough
CT: control target
= control target key end

     0   :  { %s537_s15 = smov 0   ;;  %s539_s16 = smov 0   ;;  %s582_s0 = inlined_call_operand.vmem [shape: f32[16,32], index: 0, kind: input, shape index: {}]   ;;  %s583_s1 = inlined_call_operand.vmem [shape: bf16[32,32], index: 1, kind: input, shape index: {}]   ;;  %s584_s2 = inlined_call_operand.vmem [shape: f32[1,32], index: 2, kind: input, shape index: {}]   ;;  %s585_s3 = inlined_call_operand.vmem [shape: bf16[16,32], index: 3, kind: output, shape index: {0}]   ;;  %s586_s4 = inlined_call_operand.vmem [shape: f32[16,1], index: 4, kind: output, shape index: {1}]  }
   0x1   :  { %s541_s17 = smov 0  }
   0x2 LB: > { %s27_s18 = sadd.s32 1, %s506_s16  ;;  %p446_p0 = scmp.ge.s32.totalorder %s510_s17, 1  ;;  %s510_s17 = sphi %s541_s17, %s15_s17   ;;  %s506_s16 = sphi %s539_s16, %s588_s16   ;;  %s502_s15 = sphi %s537_s15, %s587_s15  }
   0x3   : > { %p29_p1 = scmp.ge.s32.totalorder %s27_s18, 2  ;;  %p195_p2 = scmp.lt.s32.totalorder %s510_s17, 3 }
   0x5   : > { %s590_s18 = smov (%p29_p1, %s27_s18), 0  ;;  %p196_p3 = pnand %p446_p0, %p195_p2 }
   0x6   : > { %p233_p4 = scmp.lt.s32.totalorder (!%p196_p3), %s502_s15, 1 }
   0x7   : > { %199 = sbr.rel (%p196_p3) target bundleno = 154 (0x9a), region = 32 }
   0xc   : > { %v462_v0 = vld [vmem:[%s583_s1 + $0x8] sm:$0xff]  ;;  %v461_v1 = vld [vmem:[%s583_s1] sm:$0xff]  ;;  %s592_s15 = smov (!%p233_p4, %s502_s15), 1  ;;  %vm262_vm0 = vcmask 261120   ;;  %vm266_vm1 = vcmask 7168   ;;  %vm308_vm2 = vcmask 257024  }
   0xd   : > { %299 = vmatpush.bf16.msra.mxu0 %v462_v0  ;;  %s447_s23 = sshll.u32 %s592_s15, 3  ;;  %v487_v7 = vld [vmem:[%s584_s2] ss:$0 sm:$0xff]  ;;  %s448_s6 = sshll.u32 %s592_s15, 2 }
   0xe   : > { %s236_s26 = scalar_lea.vmem %s582_s0, %s447_s23  ;;  %s254_s29 = scalar_lea.vmem %s586_s4, %s447_s23 }
   0xf   : > { %v256_v2 = vld [vmem:[%s236_s26] sm:$0xff]  ;;  %s250_s9 = scalar_lea.vmem %s585_s3, %s448_s6 }
  0x10   : > { %v268_v3 = vpack.c.bf16 %v256_v2, %v256_v2  ;;  %v261_v4 = vand.u32 2147483647, %v256_v2 }
  0x11   : > { %300 = vmatpush.bf16.msra.mxu0 %v461_v1 }
  0x12   : > { %v263_v5 = vsel %vm262_vm0, %v261_v4, 0.0 }
  0x13   : > { %264 = vadd.xlane.f32.xlu0 %v263_v5 }
  0x14   : > { %458 = vmatmul.msk.bf16.vlgmr.msra.gmra.mxu0 %vm262_vm0, %v268_v3 }
  0x86   : > { %v265_v6 = vpop.xlane.xlu0 %264 }
  0x87   : > { %267 = vst.msk [vmem:[%s254_s29] sm:$0xff] %vm266_vm1, %v265_v6 }
  0x91   : > { %v302_v8 = vpop.f32.mrf.mxu0 }
  0x92   : > { %v303_v9 = vadd.f32 %v487_v7, %v302_v8 }
  0x94   : > { %v306_v10 = vmul.f32 0.17677669, %v303_v9 }
  0x96   : > { %v307_v11 = vpack.c.bf16 %v306_v10, %v306_v10 }
  0x98   : > { %309 = vst.msk [vmem:[%s250_s9] sm:$0xf] %vm308_vm2, %v307_v11 }
  0x99   : > { %v304_v12 = vpop.f32.mrf.mxu0 }
  0x9a PF: > { %s15_s17 = sadd.s32 1, %s510_s17   ;;  %s587_s15 = smov %s506_s16 }
  0x9b   : > { %p12_p5 = scmp.ge.s32.totalorder %s15_s17, 4   ;;  %s588_s16 = smov %s590_s18 }
  0x9d   :  { %14 = sbr.rel (!%p12_p5) target bundleno = 2 (0x2), region = 84 }

// kernel: attention_score.5
= control target key start
LH: loop header
LB: loop body
LE: loop exit
PB: predicated region body
PF: predicated region fallthrough
CT: control target
= control target key end

     0   :  { %9 = vsyncpa [#allocation3], 0  ;;  %s745_s0 = inlined_call_operand.vmem [shape: bf16[2,8,32], index: 0, kind: input, shape index: {}]   ;;  %s746_s1 = inlined_call_operand.vmem [shape: bf16[2,8,32], index: 1, kind: input, shape index: {}]   ;;  %s747_s2 = inlined_call_operand.vmem [shape: f32[2,1,8], index: 2, kind: input, shape index: {}]   ;;  %s748_s3 = inlined_call_operand.vmem [shape: f32[2,8,1], index: 3, kind: input, shape index: {}]   ;;  %s749_s4 = inlined_call_operand.hbm [shape: f32[2,8,8], index: 4, kind: output, shape index: {}]  }
   0x1   :  { %11 = vsyncpa [#allocation3 + $0x1], 0  ;;  %s631_s15 = smov 0   ;;  %s633_s16 = smov 0  }
   0x2   :  { %s635_s17 = smov 0   ;;  %s637_s18 = smov 0  }
   0x3   :  { %s639_s19 = smov 0   ;;  %s641_s20 = smov 0  }
   0x4 LB: > { %s448_s21 = sadd.s32 4294967295, %s603_s20   ;;  %s449_s22 = sadd.s32 4294967294, %s603_s20   ;;  %s603_s20 = sphi %s641_s20, %s17_s20   ;;  %s599_s19 = sphi %s639_s19, %s756_s19   ;;  %s595_s18 = sphi %s637_s18, %s755_s18   ;;  %s591_s17 = sphi %s635_s17, %s754_s17   ;;  %s587_s16 = sphi %s633_s16, %s753_s16   ;;  %s583_s15 = sphi %s631_s15, %s752_s15  }
   0x5   : > { %s29_s23 = sadd.s32 1, %s599_s19  ;;  %s146_s24 = sadd.s32 1, %s591_s17 }
   0x6   : > { %p31_p0 = scmp.ge.s32.totalorder %s29_s23, 2  ;;  %p156_p1 = scmp.ne.s32.totalorder %s591_s17, %s587_s16 }
   0x7   : > { %p157_p2 = scmp.eq.s32.totalorder %s448_s21, 1  ;;  %p162_p3 = scmp.ne.s32.totalorder %s587_s16, %s583_s15 }
   0x8   : > { %s758_s23 = smov (%p31_p0, %s29_s23), 0  ;;  %p163_p5 = scmp.eq.s32.totalorder %s449_s22, 1 }
   0x9   : > { %p671_p4 = por %p157_p2, %p156_p1  ;;  %s141_s26 = ssub.s32 %s599_s19, %s758_s23 }
   0xa   : > { %p452_p6 = scmp.ge.s32.totalorder %s603_s20, 1  ;;  %p144_p7 = scmp.eq.s32.totalorder %s141_s26, 0 }
   0xb   : > { %p678_p8 = por %p163_p5, %p162_p3  ;;  %p214_p9 = scmp.lt.s32.totalorder %s603_s20, 3 }
   0xc   : > { %s684_s28 = scalar_select %p144_p7, %s591_s17, %s146_s24  }
   0xd   : > { %p215_p10 = pnand %p452_p6, %p214_p9 }
   0xe   : > { %p256_p11 = scmp.lt.s32.totalorder (!%p215_p10), %s595_s18, 1  ;;  %s253_s26 = sand.u32 (!%p215_p10), 1, %s587_s16  }
   0xf   : > { %218 = sbr.rel (%p215_p10) target bundleno = 535 (0x217), region = 36  ;;  %s459_s5 = sshll.u32 (!%p215_p10), %s595_s18, 3 }
  0x10   : > { %s336_s8 = scalar_lea.hbm (!%p215_p10), %s749_s4, %s459_s5  ;;  %s325_s11 = scalar_lea.sflag (!%p215_p10), [#allocation3], %s253_s26 }
  0x11   : > { %s545_s21 = scalar_lea.hbm (!%p215_p10), %s749_s4, 16 }
  0x14   : > { %s688_s29 = scalar_select %p256_p11, %s595_s18, 1  ;;  %vm285_vm0 = vcmask 261120   ;;  %vm305_vm1 = vcmask 64512   ;;  %v605_v13 = vmov 0  }
  0x15   : > { %518 = vset.pattern.permute.xlu1 %v605_v13  ;;  %519 = vset.pattern.permute.xlu0 %v605_v13 }
  0x16   : > { %s454_s30 = sshll.u32 %s688_s29, 2  ;;  %s269_s7 = scalar_lea.vmem %s747_s2, %s688_s29 }
  0x17   : > { %s266_s10 = scalar_lea.vmem %s746_s1, %s454_s30  ;;  %s262_s13 = scalar_lea.vmem %s745_s0, %s454_s30  ;;  %v520_v3 = vld [vmem:[%s269_s7] ss:$0 sm:$0xff] }
  0x18   : > { %v279_v0 = vld [vmem:[%s266_s10] sm:$0xf]  ;;  %s456_s14 = sshll.u32 %s688_s29, 3  ;;  %s453_s30 = sshll.u32 %s253_s26, 3 }
  0x19   : > { %v290_v1 = vsel %vm285_vm0, %v279_v0, 0  ;;  %v278_v2 = vld [vmem:[%s262_s13] sm:$0xf]  ;;  %s276_s24 = scalar_lea.vmem %s748_s3, %s456_s14  ;;  %s255_s9 = scalar_lea.vmem [#allocation2], %s453_s30 }
  0x1a   : > { %299 = vmatpush.bf16.xpose.msra.mxu0 %v290_v1  ;;  %v281_v15 = vld [vmem:[%s276_s24] sm:$0xff]  ;;  %s338_s29 = sshll.u32 %s255_s9, 4  ;;  %s340_s10 = sshll.u32 %s336_s8, 4  ;;  %s339_s29 = int_to_ptr.vmem [resolvable:$true] %s338_s29  ;;  %s341_s10 = int_to_ptr.hbm [resolvable:$true] %s340_s10 }
  0x1b   : > { %s539_s12 = sshra.s32 %s341_s10, 4  ;;  %s540_s12 = int_to_ptr.hbm [resolvable:$true] %s539_s12 }
  0x1c   : > { %s541_s13 = scalar_lea.hbm %s540_s12, 8  ;;  %p546_p1 = scmp.lt.s32.totalorder %s540_s12, %s749_s4 }
  0x1d   : > { %p542_p12 = scmp.ne.s32.totalorder %s540_s12, %s541_s13  ;;  %p547_p2 = scmp.lt.s32.totalorder %s545_s21, %s541_s13 }
  0x1f   : > { %p543_p13 = pnand %p542_p12, %p671_p4  ;;  %p548_p3 = por %p547_p2, %p546_p1 }
  0x21   : > { %457 = vmatmul.msk.bf16.vlgmr.msra.gmra.mxu0 %vm285_vm0, %v278_v2  ;;  %p544_p0 = pneg %p543_p13 }
  0x23   : > { %p549_p5 = pnand %p548_p3, %p544_p0 }
  0x9e   : > { %v301_v4 = vpop.f32.mrf.mxu0 }
  0x9f   : > { %v302_v5 = vadd.f32 %v520_v3, %v301_v4 }
  0xa1   : > { %v306_v6 = vsel %vm305_vm1, %v302_v5, -inf }
  0xa2   : > { %307 = vmax.xlane.f32.xlu0 %v306_v6 }
  0xa6   : > { %v303_v7 = vpop.f32.mrf.mxu0 }
 0x115   : > { %v308_v8 = vpop.xlane.xlu0 %307 }
 0x116   : > { %v309_v9 = vsub.f32 %v302_v5, %v308_v8 }
 0x118   : > { %v310_v10 = vmul.f32 1.442695, %v309_v9 }
 0x11a   : > { %521 = vpow2.f32 %v310_v10 }
 0x120   : > { %v522_v11 = vpop.eup %521 }
 0x121   : > { %v312_v12 = vsel %vm305_vm1, %v522_v11, 0.0 }
 0x122   : > { %313 = vadd.xlane.f32.xlu0 %v312_v12 }
 0x195   : > { %v314_v14 = vpop.xlane.xlu0 %313 }
 0x196   : > { %523 = vrcp.f32 %v314_v14 }
 0x19c   : > { %v524_v16 = vpop.eup %523 }
 0x19d   : > { %v316_v17 = vmul.f32 %v524_v16, %v281_v15 }
 0x19f   : > { %319 = vperm.xlu1 %518, %v316_v17  }
 0x211   : > { %v320_v18 = vpop.permute.xlu1 %319 }
 0x212   : > { %v322_v19 = vmul.f32 %v522_v11, %v320_v18 }
 0x214   : > { %323 = vst.msk [vmem:[%s255_s9] sm:$0xff] %vm305_vm1, %v322_v19 }
 0x215   : > { %552 = shalt.err (!%p549_p5)
}
 0x216   : > { %462 = dma.vmem_to_hbm [thread:$0]  (%p671_p4), %s339_s29, 128, %s341_s10, %s325_s11  }
 0x217 PF: > { %p468_p6 = scmp.ge.s32.totalorder %s603_s20, 2  ;;  %s352_s26 = sand.u32 1, %s583_s15  }
 0x218   : > { %s353_s30 = scalar_lea.sflag [#allocation3], %s352_s26 }
 0x219   : > { %p465_p7 = pnand %p468_p6, %p678_p8 }
 0x21b   : > { %p466_p9 = pneg %p465_p7 }
 0x21d   : > { %578 = dma.done.wait (%p466_p9), %s353_s30, 128  }
 0x21e   : > { %580 = vsyncadd (%p466_p9), %s353_s30, 4294967168  ;;  %s17_s20 = sadd.s32 1, %s603_s20   ;;  %s752_s15 = smov %s587_s16 }
 0x21f   : > { %p14_p10 = scmp.ge.s32.totalorder %s17_s20, 4   ;;  %s753_s16 = smov %s591_s17 }
 0x220   : > { %s754_s17 = smov %s684_s28  ;;  %s755_s18 = smov %s599_s19 }
 0x221   : > { %s756_s19 = smov %s758_s23  ;;  %16 = sbr.rel (!%p14_p10) target bundleno = 4 (0x4), region = 80 }
 0x226   :  { %359 = vsyncpa [#allocation3], 1 }
 0x227   :  { %361 = vsyncpa [#allocation3 + $0x1], 1 }

</bundles_post_ra>
